<compile_context>
chip_gen: v7x
topology: tpu7x:2x2x1
jax: 0.10.0
libtpu: 0.0.40
codegen_flags: <defaults>
</compile_context>

<pallas_src>
import jax
import jax.numpy as jnp
from jax.experimental import pallas as pl
from jax.experimental.pallas import tpu as pltpu


def _sum_kernel(*refs):
    """Elementwise sum of all input tiles into the output tile."""
    *in_refs, o_ref = refs
    out_dtype = o_ref.dtype
    # Accumulate in f32 for floating outputs: free (idle VPU slots in a
    # mem-bound kernel) and avoids rounding drift of chained low-precision adds.
    if jnp.issubdtype(out_dtype, jnp.inexact):
        acc_dtype = jnp.float32
    else:
        acc_dtype = out_dtype
    acc = in_refs[0][...].astype(acc_dtype)
    for r in in_refs[1:]:
        acc = acc + r[...].astype(acc_dtype)
    o_ref[...] = acc.astype(out_dtype)


def _vmem_budget_bytes():
    """Per-generation VMEM budget (~0.65 of physical), conservative fallback."""
    cap = 64 << 20  # conservative default: v7x per-TC VMEM
    try:
        info = pltpu.get_tpu_info()
        cap = int(getattr(info, "vmem_capacity_bytes", cap)) or cap
    except Exception:
        pass
    return min(int(cap * 0.65), 96 << 20)


def _pick_lane_width(total):
    """Largest multiple of 128 (capped at 8192) that divides `total`, else 0."""
    best = 0
    c = 128
    while c <= 8192:
        if total % c == 0:
            best = c
        c += 128
    return best


def _sum_lane_dense(flats_2d, out_dtype):
    """Tiled lane-dense sum of (R, C) slabs (C a multiple of 128)."""
    R, C = flats_2d[0].shape
    n_in = len(flats_2d)
    dtypes = [f.dtype for f in flats_2d] + [jnp.dtype(out_dtype)]
    itemsizes = [jnp.dtype(d).itemsize for d in dtypes]
    bytes_per_row = C * sum(itemsizes)

    # Sublane packing: 8 rows (32-bit), 16 (bf16/f16), 32 (8-bit).
    sub = max(max(8, 32 // jnp.dtype(d).itemsize) for d in dtypes)

    budget = _vmem_budget_bytes()
    usable = max(budget - (4 << 20), 8 << 20)  # headroom for compiler scratch

    if R <= sub:
        tile_r = R
    else:
        # Max rows per block given double-buffered (inputs + output) tiles.
        cap_rows = usable // (2 * bytes_per_row)
        cap_rows = max(sub, (cap_rows // sub) * sub)
        # Smallest EVEN block count respecting the VMEM cap: blocks as large as
        # possible and both v7x TensorCores get near-equal work.
        nb = max(2, -(-R // cap_rows))
        if nb % 2:
            nb += 1
        tile_r = -(-R // nb)
        tile_r = -(-tile_r // sub) * sub
        tile_r = max(sub, min(tile_r, cap_rows, R))

    block = pl.BlockSpec((tile_r, C), lambda i: (i, 0))

    # TODO(synk): optionally expose input_output_aliases={0: 0} for callers
    # that can donate inputs[0]'s HBM buffer.
    return pl.pallas_call(
        _sum_kernel,
        out_shape=jax.ShapeDtypeStruct((R, C), out_dtype),
        grid_spec=pltpu.PrefetchScalarGridSpec(
            num_scalar_prefetch=0,
            grid=(pl.cdiv(R, tile_r),),
            in_specs=[block] * n_in,
            out_specs=block,
        ),
        compiler_params=pltpu.CompilerParams(
            dimension_semantics=("parallel",),
            vmem_limit_bytes=int(budget),
        ),
    )(*flats_2d)


def _sum_whole_array(arrs_2d, out_dtype):
    """Single-block (no grid) sum for small awkward-sized arrays."""
    return pl.pallas_call(
        _sum_kernel,
        out_shape=jax.ShapeDtypeStruct(arrs_2d[0].shape, out_dtype),
    )(*arrs_2d)


def sum_tensors(inputs):
    """Sums all tensors in `inputs` (mirrors the PyTorch Sum module).

    All inputs must share a shape; the result keeps inputs[0]'s dtype
    (matching PyTorch's in-place `y += x` accumulation). Mixed input dtypes
    are cast inside the kernel (no wrapper-side astype copies).
    """
    inputs = list(inputs)
    assert len(inputs) >= 1, "Sum needs at least one input"
    a = inputs[0]
    orig_shape = tuple(a.shape)
    out_dtype = a.dtype
    for x in inputs[1:]:
        assert tuple(x.shape) == orig_shape, "all inputs must share a shape"

    if len(inputs) == 1:
        return a

    total = a.size
    if total == 0:
        return a  # nothing to sum into

    C = _pick_lane_width(total)
    if C:
        # Common case: element count divisible by 128 -> free bitcast reshape
        # to a lane-dense (R, C) slab; no padding, no extra HBM traffic.
        R = total // C
        flats = [x.reshape(R, C) for x in inputs]
        out2d = _sum_lane_dense(flats, out_dtype)
        return out2d.reshape(orig_shape)

    # Awkward size (not a multiple of 128).
    ndim = len(orig_shape)
    L = orig_shape[-1] if ndim >= 1 else 1
    R2 = max(total // max(L, 1), 1)
    dtypes = [x.dtype for x in inputs] + [jnp.dtype(out_dtype)]
    padded_row = -(-R2 // 8) * 8
    padded_col = -(-L // 128) * 128
    padded_bytes = sum(padded_row * padded_col * jnp.dtype(d).itemsize
                       for d in dtypes) * 2
    if padded_bytes <= (8 << 20):
        # Small enough: single full-array block, no grid, no padding copies.
        arrs = [x.reshape(R2, L) for x in inputs]
        out2d = _sum_whole_array(arrs, out_dtype)
        return out2d.reshape(orig_shape)

    # Rare fallback: large AND not a multiple of 128.  Pad the flat tail by
    # <128 elements per input and reuse the lane-dense path.
    # TODO(synk): a manual-DMA overlapped-tail kernel would avoid these copies.
    pad = (-total) % 128
    padded_total = total + pad
    Cp = _pick_lane_width(padded_total)
    Rp = padded_total // Cp
    flats = [jnp.pad(x.reshape(-1), (0, pad)).reshape(Rp, Cp) for x in inputs]
    out2d = _sum_lane_dense(flats, out_dtype)
    return out2d.reshape(-1)[:total].reshape(orig_shape)


if __name__ == "__main__":
    key = jax.random.PRNGKey(0)
    k0, k1, k2 = jax.random.split(key, 3)

    # 1) NCHW feature maps, small shapes; three tensors to exercise "sum all"
    #    (128-divisible element count -> lane-dense divisor path, grid=1).
    x0 = jax.random.normal(k0, (2, 4, 16, 16), dtype=jnp.float32)
    x1 = jax.random.normal(k1, (2, 4, 16, 16), dtype=jnp.float32)
    x2 = jax.random.normal(k2, (2, 4, 16, 16), dtype=jnp.float32)
    y = sum_tensors([x0, x1, x2])
    jax.block_until_ready(y)
    ref = x0 + x1 + x2
    assert y.shape == ref.shape and y.dtype == ref.dtype
    assert jnp.allclose(y, ref, atol=1e-6), "mismatch vs reference sum"

    # 2) Awkward size (not a multiple of 128) -> single-block no-grid path.
    z0 = jax.random.normal(k0, (3, 5, 7), dtype=jnp.float32)
    z1 = jax.random.normal(k1, (3, 5, 7), dtype=jnp.float32)
    z = sum_tensors([z0, z1])
    jax.block_until_ready(z)
    assert jnp.allclose(z, z0 + z1, atol=1e-6), "mismatch on awkward-size case"

    # 3) Medium size -> exercises the tiled grid (even block count) path,
    #    with a mixed-dtype second input cast inside the kernel.
    w0 = jax.random.normal(k0, (4, 8, 64, 64), dtype=jnp.float32)
    w1 = jax.random.normal(k1, (4, 8, 64, 64), dtype=jnp.float32).astype(jnp.bfloat16)
    w = sum_tensors([w0, w1])
    jax.block_until_ready(w)
    wref = w0 + w1.astype(jnp.float32)
    assert w.dtype == jnp.float32
    assert jnp.allclose(w, wref, atol=1e-6), "mismatch on mixed-dtype tiled case"

    print("KERNEL_OK")
</pallas_src>

<mosaic_0001>
module attributes {stable_mosaic.version = 11 : i64} {
  func.func @_sum_kernel(%arg0: i32, %arg1: memref<1x2048xf32, #tpu.memory_space<vmem>>, %arg2: memref<1x2048xf32, #tpu.memory_space<vmem>>, %arg3: memref<1x2048xf32, #tpu.memory_space<vmem>>, %arg4: memref<1x2048xf32, #tpu.memory_space<vmem>>) attributes {dimension_semantics = [#tpu.dimension_semantics<parallel>], iteration_bounds = array<i64: 1>, scalar_prefetch = 0 : i64, scratch_operands = 0 : i64, tpu.core_type = #tpu.core_type<tc>, window_params = [{transform_indices = @transform_0, window_bounds = array<i64: 1, 2048>}, {transform_indices = @transform_1, window_bounds = array<i64: 1, 2048>}, {transform_indices = @transform_2, window_bounds = array<i64: 1, 2048>}, {transform_indices = @transform_3, window_bounds = array<i64: 1, 2048>}]} {
    %c0 = arith.constant 0 : index
    %c0_0 = arith.constant 0 : index
    %0 = vector.load %arg1[%c0, %c0_0] : memref<1x2048xf32, #tpu.memory_space<vmem>>, vector<1x2048xf32>
    %c0_1 = arith.constant 0 : index
    %c0_2 = arith.constant 0 : index
    %1 = vector.load %arg2[%c0_1, %c0_2] : memref<1x2048xf32, #tpu.memory_space<vmem>>, vector<1x2048xf32>
    %2 = arith.addf %0, %1 : vector<1x2048xf32>
    %c0_3 = arith.constant 0 : index
    %c0_4 = arith.constant 0 : index
    %3 = vector.load %arg3[%c0_3, %c0_4] : memref<1x2048xf32, #tpu.memory_space<vmem>>, vector<1x2048xf32>
    %4 = arith.addf %2, %3 : vector<1x2048xf32>
    %c0_5 = arith.constant 0 : index
    %c0_6 = arith.constant 0 : index
    %5 = vector.load %arg4[%c0_5, %c0_6] : memref<1x2048xf32, #tpu.memory_space<vmem>>, vector<1x2048xf32>
    tpu.vector_store %arg4[%c0_5, %c0_6], %4 {strides = array<i32>} : memref<1x2048xf32, #tpu.memory_space<vmem>>, vector<1x2048xf32>,
    return
  }
  func.func @transform_0(%arg0: i32) -> (i32, i32) {
    %c0_i32 = arith.constant 0 : i32
    %c0_i32_0 = arith.constant 0 : i32
    return %arg0, %c0_i32 : i32, i32
  }
  func.func @transform_1(%arg0: i32) -> (i32, i32) {
    %c0_i32 = arith.constant 0 : i32
    %c0_i32_0 = arith.constant 0 : i32
    return %arg0, %c0_i32 : i32, i32
  }
  func.func @transform_2(%arg0: i32) -> (i32, i32) {
    %c0_i32 = arith.constant 0 : i32
    %c0_i32_0 = arith.constant 0 : i32
    return %arg0, %c0_i32 : i32, i32
  }
  func.func @transform_3(%arg0: i32) -> (i32, i32) {
    %c0_i32 = arith.constant 0 : i32
    %c0_i32_0 = arith.constant 0 : i32
    return %arg0, %c0_i32 : i32, i32
  }
}

</mosaic_0001>

<bundles_post_ra>
// kernel: tpu_custom_call.1
= control target key start
LH: loop header
LB: loop body
LE: loop exit
PB: predicated region body
PF: predicated region fallthrough
CT: control target
= control target key end

     0   :  { %8 = vsyncpa [#allocation3], 0  ;;  %s248_s0 = inlined_call_operand.hbm [shape: f32[1,2048], index: 0, kind: input, shape index: {}]   ;;  %s249_s1 = inlined_call_operand.hbm [shape: f32[1,2048], index: 1, kind: input, shape index: {}]   ;;  %s250_s2 = inlined_call_operand.hbm [shape: f32[1,2048], index: 2, kind: input, shape index: {}]   ;;  %s251_s3 = inlined_call_operand.hbm [shape: f32[1,2048], index: 3, kind: output, shape index: {}]  }
   0x1   :  { %9 = vsyncpa [#allocation6], 0 }
   0x2   :  { %10 = vsyncpa [#allocation4], 0  ;;  %s176_s12 = smov [#allocation5]   ;;  %s177_s14 = smov [#allocation2]  }
   0x3   :  { %s27_s13 = sshll.u32 %s176_s12, 4  ;;  %s17_s15 = sshll.u32 %s177_s14, 4  ;;  %s28_s13 = int_to_ptr.vmem [resolvable:$true] %s27_s13  ;;  %s18_s15 = int_to_ptr.vmem [resolvable:$true] %s17_s15 }
   0x4   :  { %s82_s18 = scalar_lea.hbm %s249_s1, 256 }
   0x5   :  { %p83_p0 = scmp.ne.s32.totalorder %s249_s1, %s82_s18  ;;  %p86_p1 = scmp.lt.u32.totalorder %s82_s18, %s249_s1 }
   0x7   :  { %p88_p2 = pnand %p86_p1, %p83_p0 }
   0x9   :  { %91 = shalt.err (!%p88_p2)
}
   0xa   :  { %s92_s23 = scalar_lea.vmem %s28_s13, 256  ;;  %p97_p4 = scmp.lt.s32.totalorder %s28_s13, %s28_s13 }
   0xb   :  { %p93_p3 = scmp.ne.s32.totalorder %s28_s13, %s92_s23  ;;  %p98_p5 = scmp.lt.s32.totalorder %s92_s23, %s92_s23 }
   0xd   :  { %p99_p6 = por %p98_p5, %p97_p4 }
   0xf   :  { %p100_p7 = pnand %p99_p6, %p93_p3 }
  0x11   :  { %103 = shalt.err (!%p100_p7)
}
  0x12   :  { %30 = dma.hbm_to_vmem [thread:$0]  %s249_s1, 256, %s28_s13, [#allocation6]  }
  0x13   :  { %s104_s28 = scalar_lea.hbm %s248_s0, 256 }
  0x14   :  { %p105_p8 = scmp.ne.s32.totalorder %s248_s0, %s104_s28  ;;  %p108_p9 = scmp.lt.u32.totalorder %s104_s28, %s248_s0 }
  0x16   :  { %p110_p10 = pnand %p108_p9, %p105_p8 }
  0x18   :  { %113 = shalt.err (!%p110_p10)
}
  0x19   :  { %s114_s6 = scalar_lea.vmem %s18_s15, 256  ;;  %p119_p12 = scmp.lt.s32.totalorder %s18_s15, %s18_s15 }
  0x1a   :  { %p115_p11 = scmp.ne.s32.totalorder %s18_s15, %s114_s6  ;;  %p120_p13 = scmp.lt.s32.totalorder %s114_s6, %s114_s6 }
  0x1c   :  { %p121_p0 = por %p120_p13, %p119_p12 }
  0x1e   :  { %p122_p1 = pnand %p121_p0, %p115_p11 }
  0x20   :  { %125 = shalt.err (!%p122_p1)
}
  0x21   :  { %20 = dma.hbm_to_vmem [thread:$0]  %s248_s0, 256, %s18_s15, [#allocation3]  }
  0x22   :  { %s178_s8 = smov [#allocation7]   ;;  %s126_s12 = scalar_lea.hbm %s250_s2, 256 }
  0x23   :  { %s37_s9 = sshll.u32 %s178_s8, 4  ;;  %p127_p2 = scmp.ne.s32.totalorder %s250_s2, %s126_s12  ;;  %s38_s9 = int_to_ptr.vmem [resolvable:$true] %s37_s9 }
  0x24   :  { %p130_p3 = scmp.lt.u32.totalorder %s126_s12, %s250_s2 }
  0x26   :  { %p132_p4 = pnand %p130_p3, %p127_p2 }
  0x28   :  { %135 = shalt.err (!%p132_p4)
}
  0x29   :  { %s136_s18 = scalar_lea.vmem %s38_s9, 256  ;;  %p141_p6 = scmp.lt.s32.totalorder %s38_s9, %s38_s9 }
  0x2a   :  { %p137_p5 = scmp.ne.s32.totalorder %s38_s9, %s136_s18  ;;  %p142_p7 = scmp.lt.s32.totalorder %s136_s18, %s136_s18 }
  0x2c   :  { %p143_p8 = por %p142_p7, %p141_p6 }
  0x2e   :  { %p144_p9 = pnand %p143_p8, %p137_p5 }
  0x30   :  { %147 = shalt.err (!%p144_p9)
}
  0x31   :  { %40 = dma.hbm_to_vmem [thread:$0]  %s250_s2, 256, %s38_s9, [#allocation6]  }
  0x32   :  { %170 = dma.done.wait [#allocation3], 256  }
  0x33   :  { %171 = vsyncadd [#allocation3], 4294967040 }
  0x34   :  { %172 = dma.done.wait [#allocation6], 512  }
  0x35   :  { %173 = vsyncadd [#allocation6], 4294966784  ;;  %v50_v0 = vld [vmem:[#allocation2] sm:$0xff]  ;;  %v52_v1 = vld [vmem:[#allocation5] sm:$0xff]  ;;  %s179_s19 = smov [#allocation8]  }
  0x36   :  { %v56_v2 = vld [vmem:[#allocation7] sm:$0xff]  ;;  %v54_v3 = vadd.f32 %v52_v1, %v50_v0  ;;  %v51_v4 = vld [vmem:[#allocation2 + $0x8] sm:$0xff]  ;;  %v53_v5 = vld [vmem:[#allocation5 + $0x8] sm:$0xff]  ;;  %s68_s20 = sshll.u32 %s179_s19, 4  ;;  %s69_s20 = int_to_ptr.vmem [resolvable:$true] %s68_s20 }
  0x37   :  { %v57_v6 = vld [vmem:[#allocation7 + $0x8] sm:$0xff]  ;;  %v55_v7 = vadd.f32 %v53_v5, %v51_v4  ;;  %s148_s2 = scalar_lea.vmem %s69_s20, 256  ;;  %p153_p11 = scmp.lt.s32.totalorder %s69_s20, %s69_s20 }
  0x38   :  { %v58_v8 = vadd.f32 %v56_v2, %v54_v3  ;;  %p149_p10 = scmp.ne.s32.totalorder %s69_s20, %s148_s2  ;;  %p154_p12 = scmp.lt.s32.totalorder %s148_s2, %s148_s2 }
  0x39   :  { %v59_v9 = vadd.f32 %v57_v6, %v55_v7 }
  0x3a   :  { %60 = vst [vmem:[#allocation8] sm:$0xff] %v58_v8  ;;  %p155_p13 = por %p154_p12, %p153_p11 }
  0x3b   :  { %61 = vst [vmem:[#allocation8 + $0x8] sm:$0xff] %v59_v9 }
  0x3c   :  { %p156_p0 = pnand %p155_p13, %p149_p10 }
  0x3e   :  { %159 = shalt.err (!%p156_p0)
}
  0x3f   :  { %s160_s23 = scalar_lea.hbm %s251_s3, 256 }
  0x40   :  { %p161_p1 = scmp.ne.s32.totalorder %s251_s3, %s160_s23  ;;  %p164_p2 = scmp.lt.u32.totalorder %s160_s23, %s251_s3 }
  0x42   :  { %p166_p3 = pnand %p164_p2, %p161_p1 }
  0x44   :  { %169 = shalt.err (!%p166_p3)
}
  0x45   :  { %71 = dma.vmem_to_hbm [thread:$0]  %s69_s20, 256, %s251_s3, [#allocation4]  }
  0x46   :  { %174 = dma.done.wait [#allocation4], 256  }
  0x47   :  { %175 = vsyncadd [#allocation4], 4294967040 }
  0x48   :  { %75 = vsyncpa [#allocation3], 1 }
  0x49   :  { %76 = vsyncpa [#allocation6], 1 }
  0x4a   :  { %77 = vsyncpa [#allocation4], 1 }

</bundles_post_ra>
